<compile_context>
chip_gen: v5e
topology: v5e:2x2
jax: 0.10.0
libtpu: 0.0.40
codegen_flags: <defaults>
</compile_context>

<pallas_src>
import math

import jax
import jax.numpy as jnp
from jax.experimental import pallas as pl
from jax.experimental.pallas import tpu as pltpu


def _round_up(v, m):
    return (v + m - 1) // m * m


def _maybe_vmem_limit(need_bytes):
    """Raise the scoped-VMEM limit only when needed; stay under v7x's 64 MiB."""
    if need_bytes <= (24 << 20):
        return None
    return int(min(need_bytes, 64 << 20))


# --------------------------------------------------------------------------
# Parameter preparation (run ONCE at init time, not per forward call).
# --------------------------------------------------------------------------
def prepare_gru_params(weight_ih, weight_hh, bias_ih, bias_hh,
                       matmul_dtype=jnp.bfloat16):
    """Pre-transpose, pad to 128-lane multiples, fuse the r/z weights, and cast
    the matmul weights to `matmul_dtype`. Gate order along 3H is torch's
    [r, z, n]."""
    H3, I = weight_ih.shape
    H = H3 // 3
    assert weight_hh.shape == (3 * H, H)
    Ip, Hp = _round_up(I, 128), _round_up(H, 128)

    w_ih_t = jnp.asarray(weight_ih, jnp.float32).T      # (I, 3H)
    w_hh_t = jnp.asarray(weight_hh, jnp.float32).T      # (H, 3H)
    b_ih = jnp.asarray(bias_ih, jnp.float32)
    b_hh = jnp.asarray(bias_hh, jnp.float32)

    # ---- single-step layout: fused r/z over [x | h], separate n weights ----
    w_rz = jnp.zeros((Ip + Hp, 2 * Hp), matmul_dtype)
    w_rz = w_rz.at[:I, :H].set(w_ih_t[:, 0:H].astype(matmul_dtype))
    w_rz = w_rz.at[:I, Hp:Hp + H].set(w_ih_t[:, H:2 * H].astype(matmul_dtype))
    w_rz = w_rz.at[Ip:Ip + H, :H].set(w_hh_t[:, 0:H].astype(matmul_dtype))
    w_rz = w_rz.at[Ip:Ip + H, Hp:Hp + H].set(
        w_hh_t[:, H:2 * H].astype(matmul_dtype))

    w_in = jnp.zeros((Ip, Hp), matmul_dtype).at[:I, :H].set(
        w_ih_t[:, 2 * H:].astype(matmul_dtype))
    w_hn = jnp.zeros((Hp, Hp), matmul_dtype).at[:H, :H].set(
        w_hh_t[:, 2 * H:].astype(matmul_dtype))

    b_rz = jnp.zeros((1, 2 * Hp), jnp.float32)
    b_rz = b_rz.at[0, :H].set(b_ih[0:H] + b_hh[0:H])
    b_rz = b_rz.at[0, Hp:Hp + H].set(b_ih[H:2 * H] + b_hh[H:2 * H])
    b_in = jnp.zeros((1, Hp), jnp.float32).at[0, :H].set(b_ih[2 * H:])
    b_hn = jnp.zeros((1, Hp), jnp.float32).at[0, :H].set(b_hh[2 * H:])

    # ---- sequence layout: per-gate padded (K, 3*Hp) weights ----
    w_ih_p = jnp.zeros((Ip, 3 * Hp), matmul_dtype)
    w_hh_p = jnp.zeros((Hp, 3 * Hp), matmul_dtype)
    b_ih_p = jnp.zeros((1, 3 * Hp), jnp.float32)
    b_hh_p = jnp.zeros((1, 3 * Hp), jnp.float32)
    for g in range(3):
        w_ih_p = w_ih_p.at[:I, g * Hp:g * Hp + H].set(
            w_ih_t[:, g * H:(g + 1) * H].astype(matmul_dtype))
        w_hh_p = w_hh_p.at[:H, g * Hp:g * Hp + H].set(
            w_hh_t[:, g * H:(g + 1) * H].astype(matmul_dtype))
        b_ih_p = b_ih_p.at[0, g * Hp:g * Hp + H].set(b_ih[g * H:(g + 1) * H])
        b_hh_p = b_hh_p.at[0, g * Hp:g * Hp + H].set(b_hh[g * H:(g + 1) * H])

    return dict(I=I, H=H, Ip=Ip, Hp=Hp,
                w_rz=w_rz, w_in=w_in, w_hn=w_hn,
                b_rz=b_rz, b_in=b_in, b_hn=b_hn,
                w_ih_p=w_ih_p, w_hh_p=w_hh_p, b_ih_p=b_ih_p, b_hh_p=b_hh_p)


# --------------------------------------------------------------------------
# Single-step GRU cell kernel (== GRUCell.forward).
# --------------------------------------------------------------------------
def _gru_cell_kernel(xh_ref, w_rz_ref, w_in_ref, w_hn_ref,
                     b_rz_ref, b_in_ref, b_hn_ref, out_ref):
    Ip = w_in_ref.shape[0]
    Hp = out_ref.shape[-1]

    xh_f32 = xh_ref[...]                      # (bb, Ip+Hp) f32
    h_f32 = xh_f32[:, Ip:]                    # f32 h for the final blend
    xh = xh_f32.astype(w_rz_ref.dtype)        # bf16 operands for the MXU

    # r/z gates: one fused matmul over the concatenated [x | h] features.
    rz = jnp.dot(xh, w_rz_ref[...],
                 preferred_element_type=jnp.float32) + b_rz_ref[...]
    # n gate: i_n and h_n must stay separate (r multiplies only h_n).
    i_n = jnp.dot(xh[:, :Ip], w_in_ref[...],
                  preferred_element_type=jnp.float32) + b_in_ref[...]
    h_n = jnp.dot(xh[:, Ip:], w_hn_ref[...],
                  preferred_element_type=jnp.float32) + b_hn_ref[...]

    r = jax.nn.sigmoid(rz[:, :Hp])
    z = jax.nn.sigmoid(rz[:, Hp:])
    n = jnp.tanh(i_n + r * h_n)

    # h' = (1 - z) * n + z * h  ==  n + z * (h - n)
    out_ref[...] = (n + z * (h_f32 - n)).astype(out_ref.dtype)


def gru_cell_pallas(x, h, params, *, block_b=256):
    """x: (B, I), h: (B, H), params from prepare_gru_params. Returns (B, H)."""
    B, I = x.shape
    H = h.shape[1]
    assert (I, H) == (params["I"], params["H"])
    Ip, Hp = params["Ip"], params["Hp"]

    # Padded, concatenated [x | h] in f32 (cheap glue; weights padded at init).
    xh = jnp.zeros((B, Ip + Hp), jnp.float32)
    xh = xh.at[:, :I].set(x.astype(jnp.float32))
    xh = xh.at[:, Ip:Ip + H].set(h.astype(jnp.float32))

    bb = min(block_b, _round_up(B, 8))
    grid = (pl.cdiv(B, bb),)

    w_itemsize = params["w_rz"].dtype.itemsize
    wbytes = (params["w_rz"].size + params["w_in"].size
              + params["w_hn"].size) * w_itemsize
    iobytes = 2 * (bb * (Ip + Hp) + bb * Hp) * 4   # double-buffered x/out tiles
    vmem_limit = _maybe_vmem_limit(2 * wbytes + iobytes + (2 << 20))

    out = pl.pallas_call(
        _gru_cell_kernel,
        out_shape=jax.ShapeDtypeStruct((B, Hp), jnp.float32),
        grid=grid,
        in_specs=[
            pl.BlockSpec((bb, Ip + Hp), lambda i: (i, 0)),
            # constant index_maps: weights/biases stay VMEM resident
            pl.BlockSpec((Ip + Hp, 2 * Hp), lambda i: (0, 0)),
            pl.BlockSpec((Ip, Hp), lambda i: (0, 0)),
            pl.BlockSpec((Hp, Hp), lambda i: (0, 0)),
            pl.BlockSpec((1, 2 * Hp), lambda i: (0, 0)),
            pl.BlockSpec((1, Hp), lambda i: (0, 0)),
            pl.BlockSpec((1, Hp), lambda i: (0, 0)),
        ],
        out_specs=pl.BlockSpec((bb, Hp), lambda i: (i, 0)),
        compiler_params=pltpu.CompilerParams(
            dimension_semantics=("parallel",),
            vmem_limit_bytes=vmem_limit),
    )(xh, params["w_rz"], params["w_in"], params["w_hn"],
      params["b_rz"], params["b_in"], params["b_hn"])
    return out[:, :H]


# --------------------------------------------------------------------------
# Fused sequence kernel: time loop inside the kernel, h carried in VMEM.
# --------------------------------------------------------------------------
def _gru_seq_kernel(x_ref, h0_ref, w_ih_ref, w_hh_ref, b_ih_ref, b_hh_ref,
                    out_ref, h_scr):
    Hp = h_scr.shape[-1]
    t = pl.program_id(1)

    @pl.when(t == 0)
    def _():
        h_scr[...] = h0_ref[...]

    h = h_scr[...]                                       # (bb, Hp) f32 carry
    cd = w_ih_ref.dtype                                  # matmul compute dtype
    gi = jnp.dot(x_ref[0].astype(cd), w_ih_ref[...],
                 preferred_element_type=jnp.float32) + b_ih_ref[...]
    gh = jnp.dot(h.astype(cd), w_hh_ref[...],
                 preferred_element_type=jnp.float32) + b_hh_ref[...]

    r = jax.nn.sigmoid(gi[:, :Hp] + gh[:, :Hp])
    z = jax.nn.sigmoid(gi[:, Hp:2 * Hp] + gh[:, Hp:2 * Hp])
    n = jnp.tanh(gi[:, 2 * Hp:] + r * gh[:, 2 * Hp:])

    h_new = n + z * (h - n)
    h_scr[...] = h_new
    out_ref[0] = h_new.astype(out_ref.dtype)


def gru_sequence_pallas(x_seq, h0, params, *, block_b=256):
    """Apply the GRU cell over x_seq[t], t = 0..T-1, in one kernel.
    x_seq: (T, B, I), h0: (B, H). Returns all hidden states (T, B, H)."""
    T, B, I = x_seq.shape
    H = h0.shape[1]
    assert (I, H) == (params["I"], params["H"])
    Ip, Hp = params["Ip"], params["Hp"]

    x_p = jnp.pad(x_seq.astype(jnp.float32), ((0, 0), (0, 0), (0, Ip - I)))
    h0_p = jnp.pad(h0.astype(jnp.float32), ((0, 0), (0, Hp - H)))

    bb = min(block_b, _round_up(B, 8))
    grid = (pl.cdiv(B, bb), T)     # batch parallel (outer), time carried (inner)

    w_itemsize = params["w_ih_p"].dtype.itemsize
    wbytes = (params["w_ih_p"].size + params["w_hh_p"].size) * w_itemsize
    iobytes = 2 * (bb * Ip + 2 * bb * Hp) * 4
    vmem_limit = _maybe_vmem_limit(2 * wbytes + iobytes + (2 << 20))

    out = pl.pallas_call(
        _gru_seq_kernel,
        out_shape=jax.ShapeDtypeStruct((T, B, Hp), jnp.float32),
        grid=grid,
        in_specs=[
            pl.BlockSpec((1, bb, Ip), lambda i, t: (t, i, 0)),
            pl.BlockSpec((bb, Hp), lambda i, t: (i, 0)),
            # constant index_maps: weights are DMA'd from HBM once
            pl.BlockSpec((Ip, 3 * Hp), lambda i, t: (0, 0)),
            pl.BlockSpec((Hp, 3 * Hp), lambda i, t: (0, 0)),
            pl.BlockSpec((1, 3 * Hp), lambda i, t: (0, 0)),
            pl.BlockSpec((1, 3 * Hp), lambda i, t: (0, 0)),
        ],
        out_specs=pl.BlockSpec((1, bb, Hp), lambda i, t: (t, i, 0)),
        scratch_shapes=[pltpu.VMEM((bb, Hp), jnp.float32)],
        compiler_params=pltpu.CompilerParams(
            dimension_semantics=("parallel", "arbitrary"),
            vmem_limit_bytes=vmem_limit),
    )(x_p, h0_p, params["w_ih_p"], params["w_hh_p"],
      params["b_ih_p"], params["b_hh_p"])
    return out[:, :, :H]


# --------------------------------------------------------------------------
# Pure-JAX f32 reference matching the torch module semantics.
# --------------------------------------------------------------------------
def gru_cell_ref(x, h, weight_ih, weight_hh, bias_ih, bias_hh):
    gi = x @ weight_ih.T + bias_ih
    gh = h @ weight_hh.T + bias_hh
    H = h.shape[1]
    i_r, i_z, i_n = gi[:, :H], gi[:, H:2 * H], gi[:, 2 * H:]
    h_r, h_z, h_n = gh[:, :H], gh[:, H:2 * H], gh[:, 2 * H:]
    r = jax.nn.sigmoid(i_r + h_r)
    z = jax.nn.sigmoid(i_z + h_z)
    n = jnp.tanh(i_n + r * h_n)
    return (1.0 - z) * n + z * h


if __name__ == "__main__":
    batch, input_size, hidden_size, seq_len = 2, 16, 32, 6
    dtype = jnp.float32

    key = jax.random.PRNGKey(0)
    k_x, k_xs, k_h, k_wih, k_whh, k_bih, k_bhh = jax.random.split(key, 7)

    # uniform(-1/sqrt(hidden_size), +1/sqrt(hidden_size)) like reset_parameters()
    stdv = 1.0 / math.sqrt(hidden_size)
    weight_ih = jax.random.uniform(k_wih, (3 * hidden_size, input_size),
                                   dtype, minval=-stdv, maxval=stdv)
    weight_hh = jax.random.uniform(k_whh, (3 * hidden_size, hidden_size),
                                   dtype, minval=-stdv, maxval=stdv)
    bias_ih = jax.random.uniform(k_bih, (3 * hidden_size,), dtype,
                                 minval=-stdv, maxval=stdv)
    bias_hh = jax.random.uniform(k_bhh, (3 * hidden_size,), dtype,
                                 minval=-stdv, maxval=stdv)

    x = jax.random.normal(k_x, (batch, input_size), dtype)
    hx = jax.random.normal(k_h, (batch, hidden_size), dtype)
    x_seq = jax.random.normal(k_xs, (seq_len, batch, input_size), dtype)

    # Transpose / pad / fuse the parameters ONCE (init-time cost).
    params = prepare_gru_params(weight_ih, weight_hh, bias_ih, bias_hh)

    # --- single step (== GRUCell.forward) ---
    h_next = gru_cell_pallas(x, hx, params)
    jax.block_until_ready(h_next)
    h_ref = gru_cell_ref(x, hx, weight_ih, weight_hh, bias_ih, bias_hh)
    assert h_next.shape == (batch, hidden_size)
    # bf16 matmuls with f32 accumulation -> compare to the f32 reference with a
    # tolerance comfortably above bf16 rounding error.
    assert jnp.allclose(h_next, h_ref, atol=5e-2, rtol=5e-2), \
        float(jnp.max(jnp.abs(h_next - h_ref)))

    # --- fused sequence kernel (time loop inside the kernel) ---
    hs = gru_sequence_pallas(x_seq, hx, params)
    jax.block_until_ready(hs)
    h_t = hx
    refs = []
    for t in range(seq_len):
        h_t = gru_cell_ref(x_seq[t], h_t, weight_ih, weight_hh,
                           bias_ih, bias_hh)
        refs.append(h_t)
    hs_ref = jnp.stack(refs)
    assert hs.shape == (seq_len, batch, hidden_size)
    assert jnp.allclose(hs, hs_ref, atol=8e-2, rtol=8e-2), \
        float(jnp.max(jnp.abs(hs - hs_ref)))

    print("KERNEL_OK")
</pallas_src>

<mosaic_0001>
module attributes {stable_mosaic.version = 11 : i64} {
  func.func @_gru_cell_kernel(%arg0: i32, %arg1: memref<8x256xf32, #tpu.memory_space<vmem>>, %arg2: memref<256x256xbf16, #tpu.memory_space<vmem>>, %arg3: memref<128x128xbf16, #tpu.memory_space<vmem>>, %arg4: memref<128x128xbf16, #tpu.memory_space<vmem>>, %arg5: memref<1x256xf32, #tpu.memory_space<vmem>>, %arg6: memref<1x128xf32, #tpu.memory_space<vmem>>, %arg7: memref<1x128xf32, #tpu.memory_space<vmem>>, %arg8: memref<8x128xf32, #tpu.memory_space<vmem>>) attributes {dimension_semantics = [#tpu.dimension_semantics<parallel>], iteration_bounds = array<i64: 1>, scalar_prefetch = 0 : i64, scratch_operands = 0 : i64, tpu.core_type = #tpu.core_type<tc>, window_params = [{transform_indices = @transform_0, window_bounds = array<i64: 8, 256>}, {pipeline_mode = #tpu.pipeline_mode<synchronous>, transform_indices = @transform_1, window_bounds = array<i64: 256, 256>}, {pipeline_mode = #tpu.pipeline_mode<synchronous>, transform_indices = @transform_2, window_bounds = array<i64: 128, 128>}, {pipeline_mode = #tpu.pipeline_mode<synchronous>, transform_indices = @transform_3, window_bounds = array<i64: 128, 128>}, {pipeline_mode = #tpu.pipeline_mode<synchronous>, transform_indices = @transform_4, window_bounds = array<i64: 1, 256>}, {pipeline_mode = #tpu.pipeline_mode<synchronous>, transform_indices = @transform_5, window_bounds = array<i64: 1, 128>}, {pipeline_mode = #tpu.pipeline_mode<synchronous>, transform_indices = @transform_6, window_bounds = array<i64: 1, 128>}, {transform_indices = @transform_7, window_bounds = array<i64: 8, 128>}]} {
    %c0 = arith.constant 0 : index
    %c0_0 = arith.constant 0 : index
    %0 = vector.load %arg1[%c0, %c0_0] : memref<8x256xf32, #tpu.memory_space<vmem>>, vector<8x256xf32>
    %1 = vector.extract_strided_slice %0 {offsets = [0, 128], sizes = [8, 128], strides = [1, 1]} : vector<8x256xf32> to vector<8x128xf32>
    %2 = arith.truncf %0 : vector<8x256xf32> to vector<8x256xbf16>
    %c0_1 = arith.constant 0 : index
    %c0_2 = arith.constant 0 : index
    %3 = vector.load %arg2[%c0_1, %c0_2] : memref<256x256xbf16, #tpu.memory_space<vmem>>, vector<256x256xbf16>
    %cst = arith.constant dense<0.000000e+00> : vector<8x256xf32>
    %4 = tpu.matmul %2, %3, %cst {dimension_numbers = #tpu.dot_dimension_numbers<[1], [0], [0], [1], [0, 0, 1, 1], [], []>} : vector<8x256xbf16>, vector<256x256xbf16>, vector<8x256xf32> -> vector<8x256xf32>
    %c0_3 = arith.constant 0 : index
    %c0_4 = arith.constant 0 : index
    %5 = vector.load %arg5[%c0_3, %c0_4] : memref<1x256xf32, #tpu.memory_space<vmem>>, vector<1x256xf32>
    %6 = vector.broadcast %5 : vector<1x256xf32> to vector<8x256xf32>
    %7 = arith.addf %4, %6 : vector<8x256xf32>
    %8 = vector.extract_strided_slice %2 {offsets = [0, 0], sizes = [8, 128], strides = [1, 1]} : vector<8x256xbf16> to vector<8x128xbf16>
    %c0_5 = arith.constant 0 : index
    %c0_6 = arith.constant 0 : index
    %9 = vector.load %arg3[%c0_5, %c0_6] : memref<128x128xbf16, #tpu.memory_space<vmem>>, vector<128x128xbf16>
    %cst_7 = arith.constant dense<0.000000e+00> : vector<8x128xf32>
    %10 = tpu.matmul %8, %9, %cst_7 {dimension_numbers = #tpu.dot_dimension_numbers<[1], [0], [0], [1], [0, 0, 1, 1], [], []>} : vector<8x128xbf16>, vector<128x128xbf16>, vector<8x128xf32> -> vector<8x128xf32>
    %c0_8 = arith.constant 0 : index
    %c0_9 = arith.constant 0 : index
    %11 = vector.load %arg6[%c0_8, %c0_9] : memref<1x128xf32, #tpu.memory_space<vmem>>, vector<1x128xf32>
    %12 = vector.broadcast %11 : vector<1x128xf32> to vector<8x128xf32>
    %13 = arith.addf %10, %12 : vector<8x128xf32>
    %14 = vector.extract_strided_slice %2 {offsets = [0, 128], sizes = [8, 128], strides = [1, 1]} : vector<8x256xbf16> to vector<8x128xbf16>
    %c0_10 = arith.constant 0 : index
    %c0_11 = arith.constant 0 : index
    %15 = vector.load %arg4[%c0_10, %c0_11] : memref<128x128xbf16, #tpu.memory_space<vmem>>, vector<128x128xbf16>
    %cst_12 = arith.constant dense<0.000000e+00> : vector<8x128xf32>
    %16 = tpu.matmul %14, %15, %cst_12 {dimension_numbers = #tpu.dot_dimension_numbers<[1], [0], [0], [1], [0, 0, 1, 1], [], []>} : vector<8x128xbf16>, vector<128x128xbf16>, vector<8x128xf32> -> vector<8x128xf32>
    %c0_13 = arith.constant 0 : index
    %c0_14 = arith.constant 0 : index
    %17 = vector.load %arg7[%c0_13, %c0_14] : memref<1x128xf32, #tpu.memory_space<vmem>>, vector<1x128xf32>
    %18 = vector.broadcast %17 : vector<1x128xf32> to vector<8x128xf32>
    %19 = arith.addf %16, %18 : vector<8x128xf32>
    %20 = vector.extract_strided_slice %7 {offsets = [0, 0], sizes = [8, 128], strides = [1, 1]} : vector<8x256xf32> to vector<8x128xf32>
    %21 = arith.negf %20 : vector<8x128xf32>
    %22 = math.exp %21 : vector<8x128xf32>
    %cst_15 = arith.constant 1.000000e+00 : f32
    %23 = vector.broadcast %cst_15 : f32 to vector<8x128xf32>
    %24 = arith.addf %23, %22 : vector<8x128xf32>
    %25 = arith.divf %23, %24 : vector<8x128xf32>
    %26 = vector.extract_strided_slice %7 {offsets = [0, 128], sizes = [8, 128], strides = [1, 1]} : vector<8x256xf32> to vector<8x128xf32>
    %27 = arith.negf %26 : vector<8x128xf32>
    %28 = math.exp %27 : vector<8x128xf32>
    %cst_16 = arith.constant 1.000000e+00 : f32
    %29 = vector.broadcast %cst_16 : f32 to vector<8x128xf32>
    %30 = arith.addf %29, %28 : vector<8x128xf32>
    %31 = arith.divf %29, %30 : vector<8x128xf32>
    %32 = arith.mulf %25, %19 : vector<8x128xf32>
    %33 = arith.addf %13, %32 : vector<8x128xf32>
    %34 = math.tanh %33 : vector<8x128xf32>
    %35 = arith.subf %1, %34 : vector<8x128xf32>
    %36 = arith.mulf %31, %35 : vector<8x128xf32>
    %37 = arith.addf %34, %36 : vector<8x128xf32>
    %c0_17 = arith.constant 0 : index
    %c0_18 = arith.constant 0 : index
    %38 = vector.load %arg8[%c0_17, %c0_18] : memref<8x128xf32, #tpu.memory_space<vmem>>, vector<8x128xf32>
    tpu.vector_store %arg8[%c0_17, %c0_18], %37 {strides = array<i32>} : memref<8x128xf32, #tpu.memory_space<vmem>>, vector<8x128xf32>,
    return
  }
  func.func @transform_0(%arg0: i32) -> (i32, i32) {
    %c0_i32 = arith.constant 0 : i32
    %c0_i32_0 = arith.constant 0 : i32
    return %arg0, %c0_i32 : i32, i32
  }
  func.func @transform_1(%arg0: i32) -> (i32, i32) {
    %c0_i32 = arith.constant 0 : i32
    %c0_i32_0 = arith.constant 0 : i32
    %c0_i32_1 = arith.constant 0 : i32
    return %c0_i32, %c0_i32_0 : i32, i32
  }
  func.func @transform_2(%arg0: i32) -> (i32, i32) {
    %c0_i32 = arith.constant 0 : i32
    %c0_i32_0 = arith.constant 0 : i32
    %c0_i32_1 = arith.constant 0 : i32
    return %c0_i32, %c0_i32_0 : i32, i32
  }
  func.func @transform_3(%arg0: i32) -> (i32, i32) {
    %c0_i32 = arith.constant 0 : i32
    %c0_i32_0 = arith.constant 0 : i32
    %c0_i32_1 = arith.constant 0 : i32
    return %c0_i32, %c0_i32_0 : i32, i32
  }
  func.func @transform_4(%arg0: i32) -> (i32, i32) {
    %c0_i32 = arith.constant 0 : i32
    %c0_i32_0 = arith.constant 0 : i32
    %c0_i32_1 = arith.constant 0 : i32
    return %c0_i32, %c0_i32_0 : i32, i32
  }
  func.func @transform_5(%arg0: i32) -> (i32, i32) {
    %c0_i32 = arith.constant 0 : i32
    %c0_i32_0 = arith.constant 0 : i32
    %c0_i32_1 = arith.constant 0 : i32
    return %c0_i32, %c0_i32_0 : i32, i32
  }
  func.func @transform_6(%arg0: i32) -> (i32, i32) {
    %c0_i32 = arith.constant 0 : i32
    %c0_i32_0 = arith.constant 0 : i32
    %c0_i32_1 = arith.constant 0 : i32
    return %c0_i32, %c0_i32_0 : i32, i32
  }
  func.func @transform_7(%arg0: i32) -> (i32, i32) {
    %c0_i32 = arith.constant 0 : i32
    %c0_i32_0 = arith.constant 0 : i32
    return %arg0, %c0_i32 : i32, i32
  }
}

</mosaic_0001>

<bundles_post_ra>
// kernel: tpu_custom_call.1
= control target key start
LH: loop header
LB: loop body
LE: loop exit
PB: predicated region body
PF: predicated region fallthrough
CT: control target
= control target key end

     0   :  { %12 = vsyncpa [#allocation3], 0  ;;  %s1110_s0 = inlined_call_operand.hbm [shape: f32[2,256], index: 0, kind: input, shape index: {}]   ;;  %s1111_s1 = inlined_call_operand.hbm [shape: bf16[256,256], index: 1, kind: input, shape index: {}]   ;;  %s1112_s2 = inlined_call_operand.hbm [shape: bf16[128,128], index: 2, kind: input, shape index: {}]   ;;  %s1113_s3 = inlined_call_operand.hbm [shape: bf16[128,128], index: 3, kind: input, shape index: {}]   ;;  %s1114_s4 = inlined_call_operand.vmem [shape: f32[1,256], index: 4, kind: input, shape index: {}]   ;;  %s1115_s5 = inlined_call_operand.vmem [shape: f32[1,128], index: 5, kind: input, shape index: {}]   ;;  %s1116_s6 = inlined_call_operand.vmem [shape: f32[1,128], index: 6, kind: input, shape index: {}]   ;;  %s1117_s7 = inlined_call_operand.hbm [shape: f32[2,128], index: 7, kind: output, shape index: {}]  }
   0x1   :  { %13 = vsyncpa [#allocation6], 0 }
   0x2   :  { %14 = vsyncpa [#allocation9], 0 }
   0x3   :  { %15 = vsyncpa [#allocation4], 0  ;;  %s33_s26 = sshll.u32 %s1111_s1, 4  ;;  %s34_s26 = int_to_ptr.hbm [resolvable:$true] %s33_s26 }
   0x4   :  { %19 = vsyncadd [#allocation3], 192  ;;  %s1019_s27 = smov [#allocation5]   ;;  %s20_s8 = sshll.u32 %s1110_s0, 4  ;;  %s21_s8 = int_to_ptr.hbm [resolvable:$true] %s20_s8 }
   0x5   :  { %s35_s28 = sshll.u32 %s1019_s27, 4  ;;  %s1020_s9 = smov 128   ;;  %s36_s28 = int_to_ptr.vmem [resolvable:$true] %s35_s28 }
   0x6   :  { %s1021_s10 = smov 8   ;;  %s1022_s11 = smov [#allocation2]  }
   0x7   :  { %41 = dma.hbm_to_vmem [thread:$0]  %s34_s26, 4096, %s36_s28, [#allocation6], %s1020_s9, %s1020_s9, %s1021_s10  }
   0x8   :  { %s22_s12 = sshll.u32 %s1022_s11, 4  ;;  %s1023_s13 = smov 64   ;;  %s23_s12 = int_to_ptr.vmem [resolvable:$true] %s22_s12 }
   0x9   :  { %s1024_s14 = smov 4   ;;  %s46_s16 = sshll.u32 %s1112_s2, 4  ;;  %s47_s16 = int_to_ptr.hbm [resolvable:$true] %s46_s16 }
   0xa   :  { %28 = dma.hbm_to_vmem [thread:$0]  %s21_s8, 64, %s23_s12, [#allocation3], %s1023_s13, %s1023_s13, %s1024_s14  }
   0xb   :  { %s1025_s17 = smov [#allocation7]   ;;  %s59_s20 = sshll.u32 %s1113_s3, 4  ;;  %s60_s20 = int_to_ptr.hbm [resolvable:$true] %s59_s20 }
   0xc   :  { %s48_s18 = sshll.u32 %s1025_s17, 4  ;;  %s1026_s21 = smov [#allocation8]   ;;  %s49_s18 = int_to_ptr.vmem [resolvable:$true] %s48_s18 }
   0xd   :  { %54 = dma.hbm_to_vmem [thread:$0]  %s47_s16, 1024, %s49_s18, [#allocation6], %s1023_s13, %s1023_s13, %s1024_s14  }
   0xe   :  { %s61_s22 = sshll.u32 %s1026_s21, 4  ;;  %s62_s22 = int_to_ptr.vmem [resolvable:$true] %s61_s22 }
   0xf   :  { %67 = dma.hbm_to_vmem [thread:$0]  %s60_s20, 1024, %s62_s22, [#allocation9], %s1023_s13, %s1023_s13, %s1024_s14  }
  0x10   :  { %1011 = dma.done.wait [#allocation3], 256  }
  0x11   :  { %1012 = vsyncadd [#allocation3], 4294967040 }
  0x12   :  { %1013 = dma.done.wait [#allocation6], 5120  }
  0x13   :  { %1014 = vsyncadd [#allocation6], 4294962176 }
  0x14   :  { %1015 = dma.done.wait [#allocation9], 1024  }
  0x15   :  { %1016 = vsyncadd [#allocation9], 4294966272  ;;  %v684_v0 = vld [vmem:[#allocation5 + $0x70] sm:$0xf]  ;;  %v835_v1 = vld [vmem:[#allocation5 + $0x74] sm:$0xf0] }
  0x16   :  { %v748_v2 = vld [vmem:[#allocation5 + $0xf0] sm:$0xf]  ;;  %v685_v3 = vor.u32 %v835_v1, %v684_v0  ;;  %v851_v4 = vld [vmem:[#allocation5 + $0xf4] sm:$0xf0]  ;;  %v676_v5 = vld [vmem:[#allocation5 + $0x60] sm:$0xf] }
  0x17   :  { %v833_v6 = vld [vmem:[#allocation5 + $0x64] sm:$0xf0]  ;;  %v749_v7 = vor.u32 %v851_v4, %v748_v2  ;;  %v740_v8 = vld [vmem:[#allocation5 + $0xe0] sm:$0xf]  ;;  %v834_v10 = vld [vmem:[#allocation5 + $0x74] sm:$0xf] }
  0x18   :  { %v849_v9 = vld [vmem:[#allocation5 + $0xe4] sm:$0xf0]  ;;  %315 = vmatpush.bf16.msra.mxu0 %v685_v3  ;;  %v677_v11 = vor.u32 %v833_v6, %v676_v5  ;;  %v686_v12 = vld [vmem:[#allocation5 + $0x78] sm:$0xf0]  ;;  %v850_v13 = vld [vmem:[#allocation5 + $0xf4] sm:$0xf] }
  0x19   :  { %v750_v14 = vld [vmem:[#allocation5 + $0xf8] sm:$0xf0]  ;;  %328 = vmatpush.bf16.msra.mxu1 %v749_v7  ;;  %v741_v15 = vor.u32 %v849_v9, %v740_v8  ;;  %v689_v16 = vor.u32 %v834_v10, %v686_v12  ;;  %v668_v18 = vld [vmem:[#allocation5 + $0x50] sm:$0xf]  ;;  %v831_v19 = vld [vmem:[#allocation5 + $0x54] sm:$0xf0] }
  0x1a   :  { %v753_v17 = vor.u32 %v850_v13, %v750_v14  ;;  %v732_v20 = vld [vmem:[#allocation5 + $0xd0] sm:$0xf]  ;;  %v847_v21 = vld [vmem:[#allocation5 + $0xd4] sm:$0xf0]  ;;  %v832_v22 = vld [vmem:[#allocation5 + $0x64] sm:$0xf]  ;;  %v669_v27 = vor.u32 %v831_v19, %v668_v18 }
  0x1b   :  { %v678_v23 = vld [vmem:[#allocation5 + $0x68] sm:$0xf0]  ;;  %341 = vmatpush.bf16.msra.mxu2 %v689_v16  ;;  %v848_v25 = vld [vmem:[#allocation5 + $0xe4] sm:$0xf]  ;;  %v660_v29 = vld [vmem:[#allocation5 + $0x40] sm:$0xf]  ;;  %v733_v31 = vor.u32 %v847_v21, %v732_v20 }
  0x1c   :  { %354 = vmatpush.bf16.msra.mxu3 %v753_v17  ;;  %v681_v24 = vor.u32 %v832_v22, %v678_v23  ;;  %v742_v26 = vld [vmem:[#allocation5 + $0xe8] sm:$0xf0]  ;;  %316 = vmatpush.bf16.msra.mxu0 %v677_v11  ;;  %v829_v30 = vld [vmem:[#allocation5 + $0x44] sm:$0xf0]  ;;  %v830_v32 = vld [vmem:[#allocation5 + $0x54] sm:$0xf] }
  0x1d   :  { %v745_v28 = vor.u32 %v848_v25, %v742_v26  ;;  %329 = vmatpush.bf16.msra.mxu1 %v741_v15  ;;  %v670_v33 = vld [vmem:[#allocation5 + $0x58] sm:$0xf0]  ;;  %v846_v34 = vld [vmem:[#allocation5 + $0xd4] sm:$0xf]  ;;  %v724_v35 = vld [vmem:[#allocation5 + $0xc0] sm:$0xf]  ;;  %v661_v41 = vor.u32 %v829_v30, %v660_v29 }
  0x1e   :  { %v845_v36 = vld [vmem:[#allocation5 + $0xc4] sm:$0xf0]  ;;  %v734_v37 = vld [vmem:[#allocation5 + $0xd8] sm:$0xf0]  ;;  %v673_v38 = vor.u32 %v830_v32, %v670_v33  ;;  %v828_v40 = vld [vmem:[#allocation5 + $0x44] sm:$0xf] }
  0x1f   :  { %342 = vmatpush.bf16.msra.mxu2 %v681_v24  ;;  %v737_v39 = vor.u32 %v846_v34, %v734_v37  ;;  %v662_v42 = vld [vmem:[#allocation5 + $0x48] sm:$0xf0]  ;;  %v844_v43 = vld [vmem:[#allocation5 + $0xc4] sm:$0xf]  ;;  %v725_v45 = vor.u32 %v845_v36, %v724_v35  ;;  %v652_v46 = vld [vmem:[#allocation5 + $0x30] sm:$0xf] }
  0x20   :  { %355 = vmatpush.bf16.msra.mxu3 %v745_v28  ;;  %317 = vmatpush.bf16.msra.mxu0 %v669_v27  ;;  %v726_v44 = vld [vmem:[#allocation5 + $0xc8] sm:$0xf0]  ;;  %v827_v47 = vld [vmem:[#allocation5 + $0x34] sm:$0xf0]  ;;  %v716_v48 = vld [vmem:[#allocation5 + $0xb0] sm:$0xf]  ;;  %v665_v50 = vor.u32 %v828_v40, %v662_v42 }
  0x21   :  { %330 = vmatpush.bf16.msra.mxu1 %v733_v31  ;;  %v843_v49 = vld [vmem:[#allocation5 + $0xb4] sm:$0xf0]  ;;  %v729_v51 = vor.u32 %v844_v43, %v726_v44  ;;  %v826_v52 = vld [vmem:[#allocation5 + $0x34] sm:$0xf]  ;;  %v653_v53 = vor.u32 %v827_v47, %v652_v46  ;;  %v654_v54 = vld [vmem:[#allocation5 + $0x38] sm:$0xf0] }
  0x22   :  { %v842_v55 = vld [vmem:[#allocation5 + $0xb4] sm:$0xf]  ;;  %v718_v56 = vld [vmem:[#allocation5 + $0xb8] sm:$0xf0]  ;;  %v717_v57 = vor.u32 %v843_v49, %v716_v48  ;;  %v644_v58 = vld [vmem:[#allocation5 + $0x20] sm:$0xf]  ;;  %v657_v62 = vor.u32 %v826_v52, %v654_v54 }
  0x23   :  { %343 = vmatpush.bf16.msra.mxu2 %v673_v38  ;;  %v825_v59 = vld [vmem:[#allocation5 + $0x24] sm:$0xf0]  ;;  %v708_v60 = vld [vmem:[#allocation5 + $0xa0] sm:$0xf]  ;;  %v721_v63 = vor.u32 %v842_v55, %v718_v56  ;;  %v636_v0 = vld [vmem:[#allocation5 + $0x10] sm:$0xf] }
  0x24   :  { %356 = vmatpush.bf16.msra.mxu3 %v737_v39  ;;  %318 = vmatpush.bf16.msra.mxu0 %v661_v41  ;;  %v841_v61 = vld [vmem:[#allocation5 + $0xa4] sm:$0xf0]  ;;  %v823_v1 = vld [vmem:[#allocation5 + $0x14] sm:$0xf0]  ;;  %v824_v2 = vld [vmem:[#allocation5 + $0x24] sm:$0xf]  ;;  %v645_v3 = vor.u32 %v825_v59, %v644_v58 }
  0x25   :  { %331 = vmatpush.bf16.msra.mxu1 %v725_v45  ;;  %v646_v4 = vld [vmem:[#allocation5 + $0x28] sm:$0xf0]  ;;  %v840_v5 = vld [vmem:[#allocation5 + $0xa4] sm:$0xf]  ;;  %v709_v7 = vor.u32 %v841_v61, %v708_v60  ;;  %v700_v8 = vld [vmem:[#allocation5 + $0x90] sm:$0xf]  ;;  %v637_v18 = vor.u32 %v823_v1, %v636_v0 }
  0x26   :  { %v710_v6 = vld [vmem:[#allocation5 + $0xa8] sm:$0xf0]  ;;  %v839_v9 = vld [vmem:[#allocation5 + $0x94] sm:$0xf0]  ;;  %v1082_v10 = vld [vmem:[#allocation2] sm:$0xf]  ;;  %v649_v14 = vor.u32 %v824_v2, %v646_v4 }
  0x27   :  { %344 = vmatpush.bf16.msra.mxu2 %v665_v50  ;;  %v822_v11 = vld [vmem:[#allocation5 + $0x14] sm:$0xf]  ;;  %v1086_v13 = vld [vmem:[#allocation2 + $0x8] sm:$0xf]  ;;  %v713_v15 = vor.u32 %v840_v5, %v710_v6  ;;  %v638_v16 = vld [vmem:[#allocation5 + $0x18] sm:$0xf0]  ;;  %v701_v21 = vor.u32 %v839_v9, %v700_v8 }
  0x28   :  { %357 = vmatpush.bf16.msra.mxu3 %v729_v51  ;;  %319 = vmatpush.bf16.msra.mxu0 %v653_v53  ;;  %v1084_v12 = vld [vmem:[#allocation2 + $0x4] sm:$0xf]  ;;  %v1088_v17 = vld [vmem:[#allocation2 + $0xc] sm:$0xf]  ;;  %98 = vst [vmem:[#allocation1] ss:$4 sm:$0xff] %v1082_v10  ;;  %v641_v26 = vor.u32 %v822_v11, %v638_v16 }
  0x29   :  { %332 = vmatpush.bf16.msra.mxu1 %v717_v57  ;;  %v838_v19 = vld [vmem:[#allocation5 + $0x94] sm:$0xf]  ;;  %v702_v20 = vld [vmem:[#allocation5 + $0x98] sm:$0xf0]  ;;  %100 = vst [vmem:[#allocation1 + $0x1] ss:$4 sm:$0xff] %v1084_v12 }
  0x2a   :  { %v628_v22 = vld [vmem:[#allocation5] sm:$0xf]  ;;  %v821_v23 = vld [vmem:[#allocation5 + $0x4] sm:$0xf0]  ;;  %102 = vst [vmem:[#allocation1 + $0x2] ss:$4 sm:$0xff] %v1086_v13  ;;  %v705_v27 = vor.u32 %v838_v19, %v702_v20 }
  0x2b   :  { %345 = vmatpush.bf16.msra.mxu2 %v657_v62  ;;  %v692_v24 = vld [vmem:[#allocation5 + $0x80] sm:$0xf]  ;;  %v837_v25 = vld [vmem:[#allocation5 + $0x84] sm:$0xf0]  ;;  %104 = vst [vmem:[#allocation1 + $0x3] ss:$4 sm:$0xff] %v1088_v17  ;;  %v629_v29 = vor.u32 %v821_v23, %v628_v22 }
  0x2c   :  { %358 = vmatpush.bf16.msra.mxu3 %v721_v63  ;;  %320 = vmatpush.bf16.msra.mxu0 %v645_v3  ;;  %v820_v28 = vld [vmem:[#allocation5 + $0x4] sm:$0xf]  ;;  %v630_v30 = vld [vmem:[#allocation5 + $0x8] sm:$0xf0]  ;;  %v693_v33 = vor.u32 %v837_v25, %v692_v24  ;;  %v859_v34 = vld [vmem:[#allocation7 + $0x38] sm:$0xff] }
  0x2d   :  { %333 = vmatpush.bf16.msra.mxu1 %v709_v7  ;;  %v836_v31 = vld [vmem:[#allocation5 + $0x84] sm:$0xf]  ;;  %v694_v32 = vld [vmem:[#allocation5 + $0x88] sm:$0xf0]  ;;  %v867_v35 = vld [vmem:[#allocation8 + $0x38] sm:$0xff]  ;;  %v633_v36 = vor.u32 %v820_v28, %v630_v30 }
  0x2e   :  { %v697_v37 = vor.u32 %v836_v31, %v694_v32  ;;  %v858_v38 = vld [vmem:[#allocation7 + $0x30] sm:$0xff]  ;;  %v857_v47 = vld [vmem:[#allocation7 + $0x28] sm:$0xff]  ;;  %v856_v49 = vld [vmem:[#allocation7 + $0x20] sm:$0xff] }
  0x2f   :  { %346 = vmatpush.bf16.msra.mxu2 %v649_v14  ;;  %v866_v42 = vld [vmem:[#allocation8 + $0x30] sm:$0xff]  ;;  %v865_v48 = vld [vmem:[#allocation8 + $0x28] sm:$0xff]  ;;  %v864_v50 = vld [vmem:[#allocation8 + $0x20] sm:$0xff] }
  0x30   :  { %359 = vmatpush.bf16.msra.mxu3 %v713_v15  ;;  %321 = vmatpush.bf16.msra.mxu0 %v637_v18  ;;  %v855_v51 = vld [vmem:[#allocation7 + $0x18] sm:$0xff]  ;;  %v854_v53 = vld [vmem:[#allocation7 + $0x10] sm:$0xff]  ;;  %v853_v55 = vld [vmem:[#allocation7 + $0x8] sm:$0xff] }
  0x31   :  { %334 = vmatpush.bf16.msra.mxu1 %v701_v21  ;;  %v863_v52 = vld [vmem:[#allocation8 + $0x18] sm:$0xff]  ;;  %v862_v54 = vld [vmem:[#allocation8 + $0x10] sm:$0xff]  ;;  %v861_v56 = vld [vmem:[#allocation8 + $0x8] sm:$0xff] }
  0x32   :  { %v105_v39 = vld.sshfl [vmem:[#allocation1] sm:$0xff pattern:$0x73625140]  ;;  %v106_v40 = vld.sshfl [vmem:[#allocation1 + $0x8] sm:$0xff pattern:$0x73625140] }
  0x33   :  { %347 = vmatpush.bf16.msra.mxu2 %v641_v26  ;;  %v109_v41 = vpack.c.bf16 %v106_v40, %v105_v39  ;;  %v852_v57 = vld [vmem:[#allocation7] sm:$0xff]  ;;  %v142_v59 = vld [vmem:[%s1114_s4] sm:$0x3] }
  0x34   :  { %360 = vmatpush.bf16.msra.mxu3 %v705_v27  ;;  %322 = vmatpush.bf16.msra.mxu0 %v629_v29  ;;  %v860_v58 = vld [vmem:[#allocation8] sm:$0xff]  ;;  %v144_v60 = vperm.slane %v142_v59, 0  ;;  %v145_v1 = vperm.slane %v142_v59, 1  ;;  %v880_v24 = vld [vmem:[%s1116_s6] ss:$0 sm:$0xff] }
  0x35   :  { %335 = vmatpush.bf16.msra.mxu1 %v693_v33  ;;  %v149_v43 = vunpack.c.l.b16 %v109_v41  ;;  %v150_v44 = vunpack.c.h.b16 %v109_v41  ;;  %v879_v27 = vld [vmem:[%s1115_s5] ss:$0 sm:$0xff] }
  0x37   :  { %348 = vmatpush.bf16.msra.mxu2 %v633_v36  ;;  %v151_v45 = vpack.c.b16 %v149_v43, %v149_v43  ;;  %v152_v46 = vpack.c.b16 %v150_v44, %v150_v44  ;;  %v571_v43 = vrot.slane %v1084_v12, 2  ;;  %v572_v44 = vrot.slane %v1086_v13, 2 }
  0x38   :  { %435 = vmatpush.bf16.msrb.mxu0 %v859_v34  ;;  %361 = vmatpush.bf16.msra.mxu3 %v697_v37 }
  0x39   :  { %516 = vmatpush.bf16.msrb.mxu1 %v867_v35  ;;  %323 = vmatmul.bf16.vlgmr.msra.gmra.mxu0 %v151_v45 }
  0x3a   :  { %336 = vmatmul.bf16.vlgmr.msra.gmra.mxu1 %v152_v46  ;;  %349 = vmatmul.bf16.vlgmr.msra.gmra.mxu2 %v151_v45  ;;  %v573_v45 = vrot.slane %v1088_v17, 2 }
  0x3b   :  { %362 = vmatmul.bf16.vlgmr.msra.gmra.mxu3 %v152_v46 }
  0x3c   :  { %436 = vmatpush.bf16.msrb.mxu0 %v858_v38 }
  0x3d   :  { %517 = vmatpush.bf16.msrb.mxu1 %v866_v42  ;;  %v570_v42 = vrot.slane %v1082_v10, 2 }
  0x40   :  { %437 = vmatpush.bf16.msrb.mxu0 %v857_v47 }
  0x41   :  { %518 = vmatpush.bf16.msrb.mxu1 %v865_v48 }
  0x44   :  { %438 = vmatpush.bf16.msrb.mxu0 %v856_v49 }
  0x45   :  { %519 = vmatpush.bf16.msrb.mxu1 %v864_v50 }
  0x48   :  { %439 = vmatpush.bf16.msrb.mxu0 %v855_v51 }
  0x49   :  { %520 = vmatpush.bf16.msrb.mxu1 %v863_v52 }
  0x4c   :  { %440 = vmatpush.bf16.msrb.mxu0 %v854_v53 }
  0x4d   :  { %521 = vmatpush.bf16.msrb.mxu1 %v862_v54 }
  0x50   :  { %441 = vmatpush.bf16.msrb.mxu0 %v853_v55 }
  0x51   :  { %522 = vmatpush.bf16.msrb.mxu1 %v861_v56 }
  0x54   :  { %442 = vmatpush.bf16.msrb.mxu0 %v852_v57 }
  0x55   :  { %523 = vmatpush.bf16.msrb.mxu1 %v860_v58 }
  0x57   :  { %443 = vmatmul.bf16.vlgmr.msrb.gmra.mxu0 %v109_v41 }
  0x58   :  { %524 = vmatmul.bf16.vlgmr.msrb.gmra.mxu1 %v152_v46 }
  0xb6   :  { %v324_v61 = vpop.f32.mrf.mxu0 }
  0xb7   :  { %v337_v62 = vpop.f32.mrf.mxu1  ;;  %v325_v63 = vadd.f32 %v324_v61, %v144_v60 }
  0xb9   :  { %v338_v0 = vadd.f32 %v337_v62, %v325_v63 }
  0xbb   :  { %v818_v2 = vmul.f32 -1.442695, %v338_v0 }
  0xbd   :  { %881 = vpow2.f32 %v818_v2  ;;  %v350_v3 = vpop.f32.mrf.mxu2 }
  0xbe   :  { %v363_v4 = vpop.f32.mrf.mxu3  ;;  %v326_v5 = vpop.f32.mrf.mxu0  ;;  %v351_v7 = vadd.f32 %v350_v3, %v145_v1 }
  0xbf   :  { %v339_v6 = vpop.f32.mrf.mxu1 }
  0xc0   :  { %v364_v8 = vadd.f32 %v363_v4, %v351_v7 }
  0xc2   :  { %v819_v11 = vmul.f32 -1.442695, %v364_v8 }
  0xc3   :  { %v882_v9 = vpop.eup %881 }
  0xc4   :  { %v532_v14 = vadd.f32 1.0, %v882_v9 }
  0xc5   :  { %v352_v15 = vpop.f32.mrf.mxu2 }
  0xc6   :  { %v365_v16 = vpop.f32.mrf.mxu3  ;;  %883 = vrcp.f32 %v532_v14  ;;  %v544_v26 = vand.u32 2147483648, %v532_v14  ;;  %v542_v29 = vand.u32 2147483647, %v532_v14  ;;  %vm538_vm1 = vweird.f32 %v532_v14 }
  0xc7   :  { %885 = vpow2.f32 %v819_v11 }
  0xc8   :  { %v545_v32 = vor.u32 1.1754944e-38, %v544_v26  ;;  %vm543_vm3 = vcmp.eq.f32.partialorder %v542_v29, 8.507059e+37 }
  0xcc   :  { %v884_v18 = vpop.eup %883 }
  0xcd   :  { %v886_v19 = vpop.eup %885  ;;  %v534_v20 = vmul.f32 %v884_v18, %v532_v14  ;;  %vm539_vm0 = vweird.f32 %v884_v18 }
  0xce   :  { %v551_v23 = vadd.f32 1.0, %v886_v19  ;;  %vm540_vm2 = vmor %vm538_vm1, %vm539_vm0 }
  0xcf   :  { %v535_v25 = vsub.f32 1.0, %v534_v20 }
  0xd0   :  { %887 = vrcp.f32 %v551_v23  ;;  %vm557_vm4 = vweird.f32 %v551_v23  ;;  %v563_v10 = vand.u32 2147483648, %v551_v23  ;;  %v561_v13 = vand.u32 2147483647, %v551_v23 }
  0xd1   :  { %v536_v28 = vmul.f32 %v884_v18, %v535_v25 }
  0xd2   :  { %v564_v17 = vor.u32 1.1754944e-38, %v563_v10  ;;  %vm562_vm7 = vcmp.eq.f32.partialorder %v561_v13, 8.507059e+37 }
  0xd3   :  { %v537_v31 = vadd.f32 %v884_v18, %v536_v28 }
  0xd4   :  { %v444_v21 = vpop.f32.mrf.mxu0 }
  0xd5   :  { %v525_v22 = vpop.f32.mrf.mxu1  ;;  %v445_v33 = vadd.f32 %v879_v27, %v444_v21  ;;  %v541_v34 = vsel %vm540_vm2, %v884_v18, %v537_v31 }
  0xd6   :  { %v526_v30 = vadd.f32 %v880_v24, %v525_v22  ;;  %v546_v35 = vsel %vm543_vm3, %v545_v32, %v541_v34  ;;  %v888_v39 = vpop.eup %887 }
  0xd7   :  { %v553_v41 = vmul.f32 %v888_v39, %v551_v23  ;;  %vm558_vm5 = vweird.f32 %v888_v39 }
  0xd8   :  { %v567_v38 = vmul.f32 %v546_v35, %v526_v30  ;;  %vm559_vm6 = vmor %vm557_vm4, %vm558_vm5 }
  0xd9   :  { %v554_v46 = vsub.f32 1.0, %v553_v41 }
  0xda   :  { %v568_v40 = vadd.f32 %v567_v38, %v445_v33 }
  0xdb   :  { %v555_v52 = vmul.f32 %v888_v39, %v554_v46 }
  0xdc   :  { %v446_v36 = vpop.f32.mrf.mxu0  ;;  %889 = vtanh.f32 %v568_v40 }
  0xdd   :  { %v527_v37 = vpop.f32.mrf.mxu1  ;;  %v556_v12 = vadd.f32 %v888_v39, %v555_v52 }
  0xdf   :  { %v560_v56 = vsel %vm559_vm6, %v888_v39, %v556_v12 }
  0xe0   :  { %v565_v57 = vsel %vm562_vm7, %v564_v17, %v560_v56 }
  0xe2   :  { %v890_v47 = vpop.eup %889 }
  0xe3   :  { %v579_v48 = vrot.slane %v890_v47, 2  ;;  %v580_v49 = vrot.slane %v890_v47, 4  ;;  %v581_v50 = vrot.slane %v890_v47, 6  ;;  %v585_v51 = vsub.f32 %v570_v42, %v890_v47 }
  0xe5   :  { %v586_v53 = vsub.f32 %v571_v43, %v579_v48  ;;  %v587_v54 = vsub.f32 %v572_v44, %v580_v49  ;;  %v588_v55 = vsub.f32 %v573_v45, %v581_v50  ;;  %593 = vst [vmem:[#allocation1] ss:$4 sm:$0xff] %v585_v51 }
  0xe7   :  { %595 = vst [vmem:[#allocation1 + $0x1] ss:$4 sm:$0xff] %v586_v53 }
  0xe8   :  { %597 = vst [vmem:[#allocation1 + $0x2] ss:$4 sm:$0xff] %v587_v54 }
  0xe9   :  { %599 = vst [vmem:[#allocation1 + $0x3] ss:$4 sm:$0xff] %v588_v55 }
  0xf0   :  { %v600_v58 = vld.sshfl [vmem:[#allocation1] sm:$0xff pattern:$0x73625140] }
  0xf1   :  { %v602_v59 = vmul.f32 %v600_v58, %v565_v57 }
  0xf3   :  { %v603_v60 = vadd.f32 %v890_v47, %v602_v59 }
  0xf5   :  { %604 = vst [vmem:[#allocation10] sm:$0xff] %v603_v60 }
  0xf6   :  { %608 = vsyncadd [#allocation4], 96  ;;  %s611_s26 = sshll.u32 %s1117_s7, 4  ;;  %s1027_s27 = smov [#allocation10]   ;;  %s612_s26 = int_to_ptr.hbm [resolvable:$true] %s611_s26 }
  0xf7   :  { %s609_s28 = sshll.u32 %s1027_s27, 4  ;;  %s1028_s29 = smov 32   ;;  %s610_s28 = int_to_ptr.vmem [resolvable:$true] %s609_s28 }
  0xf8   :  { %s1029_s30 = smov 2  }
  0xf9   :  { %617 = dma.vmem_to_hbm [thread:$0]  %s610_s28, 32, %s612_s26, [#allocation4], %s1028_s29, %s1028_s29, %s1029_s30  }
  0xfa   :  { %1017 = dma.done.wait [#allocation4], 128  }
  0xfb   :  { %1018 = vsyncadd [#allocation4], 4294967168 }
  0xfc   :  { %622 = vsyncpa [#allocation3], 1 }
  0xfd   :  { %623 = vsyncpa [#allocation6], 1 }
  0xfe   :  { %624 = vsyncpa [#allocation9], 1 }
  0xff   :  { %625 = vsyncpa [#allocation4], 1 }

</bundles_post_ra>
